<compile_context>
chip_gen: v5e
topology: v5e:2x2
jax: 0.10.0
libtpu: 0.0.40
codegen_flags: <defaults>
</compile_context>

<pallas_src>
import math
import jax
import jax.numpy as jnp
from jax.experimental import pallas as pl
from jax.experimental.pallas import tpu as pltpu

WSIZE = 11          # SSIM gaussian window size
PAD = WSIZE // 2    # zero padding (same as F.conv2d(padding=window_size//2))
SIGMA = 1.5
C1 = 0.01 ** 2
C2 = 0.03 ** 2


def _gaussian_1d():
    g = [math.exp(-((k - WSIZE // 2) ** 2) / (2.0 * SIGMA ** 2)) for k in range(WSIZE)]
    s = sum(g)
    return [v / s for v in g]   # normalized -> outer(g, g) is the 2-D window


def _band_matrix(n, gauss):
    """Banded symmetric matrix B with B[i, j] = gauss[j - i + PAD] (zero-pad conv)."""
    idx = jnp.arange(n)
    diff = idx[None, :] - idx[:, None] + PAD          # (n, n)
    valid = (diff >= 0) & (diff < WSIZE)
    gvals = jnp.asarray(gauss, jnp.float32)
    return jnp.where(valid, gvals[jnp.clip(diff, 0, WSIZE - 1)], jnp.float32(0.0))


def _make_kernel(PB, H, LW):
    """PB packed groups per grid step; each group is an (H, LW) lane-packed slab."""

    def kernel(x_ref, y_ref, gv_ref, gh_ref, ssim_sum_ref, sq_sum_ref):
        i = pl.program_id(0)
        gv = gv_ref[...]          # (H, H)   banded Gaussian, vertical pass
        gh = gh_ref[...]          # (LW, LW) block-diagonal banded Gaussian, horizontal

        ssim_acc = jnp.float32(0.0)
        sq_acc = jnp.float32(0.0)

        for b in range(PB):       # small static unroll (PB <= 8)
            x = x_ref[b].astype(jnp.float32)   # (H, LW)
            y = y_ref[b].astype(jnp.float32)   # (H, LW)

            def conv(img):
                # horizontal then vertical Gaussian pass, both on the MXU
                t = jnp.dot(img, gh, preferred_element_type=jnp.float32)
                return jnp.dot(gv, t, preferred_element_type=jnp.float32)

            mu1 = conv(x)
            mu2 = conv(y)
            s11 = conv(x * x) - mu1 * mu1
            s22 = conv(y * y) - mu2 * mu2
            s12 = conv(x * y) - mu1 * mu2

            num = (2.0 * mu1 * mu2 + C1) * (2.0 * s12 + C2)
            den = (mu1 * mu1 + mu2 * mu2 + C1) * (s11 + s22 + C2)
            ssim_acc = ssim_acc + jnp.sum(num / den)

            d = x - y
            sq_acc = sq_acc + jnp.sum(d * d)

        ssim_sum_ref[i] = ssim_acc
        sq_sum_ref[i] = sq_acc

    return kernel


def consistency_loss(x, y):
    """x, y: NCHW arrays (f32 or bf16). Returns scalar loss = MSE + (1 - SSIM)."""
    N, C, H, W = x.shape
    NC = N * C
    gauss = _gaussian_1d()

    # ---- lane packing: LP planes along lanes so LP*W is lane-dense (==128) ----
    LP = 1
    if W < 128 and 128 % W == 0:
        cand = 128 // W                    # power of two
        while cand > 1 and NC % cand != 0:
            cand //= 2
        LP = cand
    LW = LP * W
    P = NC // LP                           # number of packed groups

    xr = x.reshape(NC, H, W)
    yr = y.reshape(NC, H, W)
    if LP > 1:
        xr = xr.reshape(P, LP, H, W).transpose(0, 2, 1, 3).reshape(P, H, LW)
        yr = yr.reshape(P, LP, H, W).transpose(0, 2, 1, 3).reshape(P, H, LW)
    else:
        xr = xr.reshape(P, H, LW)
        yr = yr.reshape(P, H, LW)

    # ---- banded Gaussian matrices (zero padding baked in) ----
    gv = _band_matrix(H, gauss)                                   # (H, H)
    gh = _band_matrix(W, gauss)                                   # (W, W)
    if LP > 1:
        gh = jnp.kron(jnp.eye(LP, dtype=jnp.float32), gh)         # (LW, LW) block diag

    # ---- block PB packed groups per grid step (amortize per-step overhead) ----
    group_bytes = H * LW * 4
    PB = 1
    for cand in range(min(P, 8), 0, -1):
        if P % cand == 0 and cand * group_bytes <= (512 * 1024):
            PB = cand
            break
    steps = P // PB

    ssim_sums, sq_sums = pl.pallas_call(
        _make_kernel(PB, H, LW),
        out_shape=(jax.ShapeDtypeStruct((steps,), jnp.float32),
                   jax.ShapeDtypeStruct((steps,), jnp.float32)),
        grid_spec=pltpu.PrefetchScalarGridSpec(
            num_scalar_prefetch=0,
            grid=(steps,),
            in_specs=[pl.BlockSpec((PB, H, LW), lambda i: (i, 0, 0)),
                      pl.BlockSpec((PB, H, LW), lambda i: (i, 0, 0)),
                      pl.BlockSpec((H, H), lambda i: (0, 0)),
                      pl.BlockSpec((LW, LW), lambda i: (0, 0))],
            out_specs=(pl.BlockSpec(memory_space=pltpu.MemorySpace.SMEM),
                       pl.BlockSpec(memory_space=pltpu.MemorySpace.SMEM)),
        ),
        # NOTE: kept "arbitrary" because the outputs are whole SMEM arrays written
        # via program_id (safe on 1-TC parts; blocked per-step outputs would be
        # needed before marking this axis "parallel" for v7x's 2 TensorCores).
        compiler_params=pltpu.CompilerParams(dimension_semantics=("arbitrary",)),
    )(xr, yr, gv, gh)

    n_elem = N * C * H * W
    mse = jnp.sum(sq_sums) / n_elem
    mean_ssim = jnp.sum(ssim_sums) / n_elem
    return mse + (1.0 - mean_ssim)


def _reference_loss(x, y):
    """Pure-JAX reference of the same math (for sanity checking)."""
    N, C, H, W = x.shape
    g = jnp.asarray(_gaussian_1d(), jnp.float32)
    xr = x.reshape(N * C, H, W).astype(jnp.float32)
    yr = y.reshape(N * C, H, W).astype(jnp.float32)

    def conv(img):
        p = jnp.pad(img, ((0, 0), (PAD, PAD), (PAD, PAD)))
        h = sum(g[k] * p[:, :, k:k + W] for k in range(WSIZE))
        return sum(g[k] * h[:, k:k + H, :] for k in range(WSIZE))

    mu1, mu2 = conv(xr), conv(yr)
    s11 = conv(xr * xr) - mu1 * mu1
    s22 = conv(yr * yr) - mu2 * mu2
    s12 = conv(xr * yr) - mu1 * mu2
    ssim_map = ((2 * mu1 * mu2 + C1) * (2 * s12 + C2)) / \
               ((mu1 * mu1 + mu2 * mu2 + C1) * (s11 + s22 + C2))
    mse = jnp.mean((xr - yr) ** 2)
    return mse + (1.0 - jnp.mean(ssim_map))


if __name__ == "__main__":
    key = jax.random.PRNGKey(0)
    kx, ky = jax.random.split(key)
    N, C, H, W = 2, 4, 16, 16
    x = jax.random.uniform(kx, (N, C, H, W), jnp.float32)
    y = x + 0.05 * jax.random.normal(ky, (N, C, H, W), jnp.float32)

    loss = consistency_loss(x, y)
    jax.block_until_ready(loss)

    ref = _reference_loss(x, y)
    assert jnp.allclose(loss, ref, rtol=1e-4, atol=1e-4), (loss, ref)

    print("KERNEL_OK")
</pallas_src>

<mosaic_0001>
module attributes {stable_mosaic.version = 11 : i64} {
  func.func @kernel(%arg0: i32, %arg1: memref<1x16x128xf32, #tpu.memory_space<vmem>>, %arg2: memref<1x16x128xf32, #tpu.memory_space<vmem>>, %arg3: memref<16x16xf32, #tpu.memory_space<vmem>>, %arg4: memref<128x128xf32, #tpu.memory_space<vmem>>, %arg5: memref<1xf32, #tpu.memory_space<smem>>, %arg6: memref<1xf32, #tpu.memory_space<smem>>) attributes {dimension_semantics = [#tpu.dimension_semantics<arbitrary>], iteration_bounds = array<i64: 1>, scalar_prefetch = 0 : i64, scratch_operands = 0 : i64, tpu.core_type = #tpu.core_type<tc>, window_params = [{transform_indices = @transform_0, window_bounds = array<i64: 1, 16, 128>}, {transform_indices = @transform_1, window_bounds = array<i64: 1, 16, 128>}, {pipeline_mode = #tpu.pipeline_mode<synchronous>, transform_indices = @transform_2, window_bounds = array<i64: 16, 16>}, {pipeline_mode = #tpu.pipeline_mode<synchronous>, transform_indices = @transform_3, window_bounds = array<i64: 128, 128>}, {transform_indices = @transform_4, window_bounds = array<i64: 1>}, {transform_indices = @transform_5, window_bounds = array<i64: 1>}]} {
    %c0 = arith.constant 0 : index
    %c0_0 = arith.constant 0 : index
    %0 = vector.load %arg3[%c0, %c0_0] : memref<16x16xf32, #tpu.memory_space<vmem>>, vector<16x16xf32>
    %c0_1 = arith.constant 0 : index
    %c0_2 = arith.constant 0 : index
    %1 = vector.load %arg4[%c0_1, %c0_2] : memref<128x128xf32, #tpu.memory_space<vmem>>, vector<128x128xf32>
    %c0_3 = arith.constant 0 : index
    %c0_4 = arith.constant 0 : index
    %c0_5 = arith.constant 0 : index
    %2 = vector.load %arg1[%c0_3, %c0_4, %c0_5] : memref<1x16x128xf32, #tpu.memory_space<vmem>>, vector<1x16x128xf32>
    %3 = vector.shape_cast %2 : vector<1x16x128xf32> to vector<16x128xf32>
    %c0_6 = arith.constant 0 : index
    %c0_7 = arith.constant 0 : index
    %c0_8 = arith.constant 0 : index
    %4 = vector.load %arg2[%c0_6, %c0_7, %c0_8] : memref<1x16x128xf32, #tpu.memory_space<vmem>>, vector<1x16x128xf32>
    %5 = vector.shape_cast %4 : vector<1x16x128xf32> to vector<16x128xf32>
    %cst = arith.constant dense<0.000000e+00> : vector<16x128xf32>
    %6 = tpu.matmul %3, %1, %cst {dimension_numbers = #tpu.dot_dimension_numbers<[1], [0], [0], [1], [0, 0, 1, 1], [], []>} : vector<16x128xf32>, vector<128x128xf32>, vector<16x128xf32> -> vector<16x128xf32>
    %cst_9 = arith.constant dense<0.000000e+00> : vector<16x128xf32>
    %7 = tpu.matmul %0, %6, %cst_9 {dimension_numbers = #tpu.dot_dimension_numbers<[1], [0], [0], [1], [0, 0, 1, 1], [], []>} : vector<16x16xf32>, vector<16x128xf32>, vector<16x128xf32> -> vector<16x128xf32>
    %cst_10 = arith.constant dense<0.000000e+00> : vector<16x128xf32>
    %8 = tpu.matmul %5, %1, %cst_10 {dimension_numbers = #tpu.dot_dimension_numbers<[1], [0], [0], [1], [0, 0, 1, 1], [], []>} : vector<16x128xf32>, vector<128x128xf32>, vector<16x128xf32> -> vector<16x128xf32>
    %cst_11 = arith.constant dense<0.000000e+00> : vector<16x128xf32>
    %9 = tpu.matmul %0, %8, %cst_11 {dimension_numbers = #tpu.dot_dimension_numbers<[1], [0], [0], [1], [0, 0, 1, 1], [], []>} : vector<16x16xf32>, vector<16x128xf32>, vector<16x128xf32> -> vector<16x128xf32>
    %10 = arith.mulf %3, %3 : vector<16x128xf32>
    %cst_12 = arith.constant dense<0.000000e+00> : vector<16x128xf32>
    %11 = tpu.matmul %10, %1, %cst_12 {dimension_numbers = #tpu.dot_dimension_numbers<[1], [0], [0], [1], [0, 0, 1, 1], [], []>} : vector<16x128xf32>, vector<128x128xf32>, vector<16x128xf32> -> vector<16x128xf32>
    %cst_13 = arith.constant dense<0.000000e+00> : vector<16x128xf32>
    %12 = tpu.matmul %0, %11, %cst_13 {dimension_numbers = #tpu.dot_dimension_numbers<[1], [0], [0], [1], [0, 0, 1, 1], [], []>} : vector<16x16xf32>, vector<16x128xf32>, vector<16x128xf32> -> vector<16x128xf32>
    %13 = arith.mulf %7, %7 : vector<16x128xf32>
    %14 = arith.subf %12, %13 : vector<16x128xf32>
    %15 = arith.mulf %5, %5 : vector<16x128xf32>
    %cst_14 = arith.constant dense<0.000000e+00> : vector<16x128xf32>
    %16 = tpu.matmul %15, %1, %cst_14 {dimension_numbers = #tpu.dot_dimension_numbers<[1], [0], [0], [1], [0, 0, 1, 1], [], []>} : vector<16x128xf32>, vector<128x128xf32>, vector<16x128xf32> -> vector<16x128xf32>
    %cst_15 = arith.constant dense<0.000000e+00> : vector<16x128xf32>
    %17 = tpu.matmul %0, %16, %cst_15 {dimension_numbers = #tpu.dot_dimension_numbers<[1], [0], [0], [1], [0, 0, 1, 1], [], []>} : vector<16x16xf32>, vector<16x128xf32>, vector<16x128xf32> -> vector<16x128xf32>
    %18 = arith.mulf %9, %9 : vector<16x128xf32>
    %19 = arith.subf %17, %18 : vector<16x128xf32>
    %20 = arith.mulf %3, %5 : vector<16x128xf32>
    %cst_16 = arith.constant dense<0.000000e+00> : vector<16x128xf32>
    %21 = tpu.matmul %20, %1, %cst_16 {dimension_numbers = #tpu.dot_dimension_numbers<[1], [0], [0], [1], [0, 0, 1, 1], [], []>} : vector<16x128xf32>, vector<128x128xf32>, vector<16x128xf32> -> vector<16x128xf32>
    %cst_17 = arith.constant dense<0.000000e+00> : vector<16x128xf32>
    %22 = tpu.matmul %0, %21, %cst_17 {dimension_numbers = #tpu.dot_dimension_numbers<[1], [0], [0], [1], [0, 0, 1, 1], [], []>} : vector<16x16xf32>, vector<16x128xf32>, vector<16x128xf32> -> vector<16x128xf32>
    %23 = arith.mulf %7, %9 : vector<16x128xf32>
    %24 = arith.subf %22, %23 : vector<16x128xf32>
    %cst_18 = arith.constant 2.000000e+00 : f32
    %25 = vector.broadcast %cst_18 : f32 to vector<16x128xf32>
    %26 = arith.mulf %25, %7 : vector<16x128xf32>
    %27 = arith.mulf %26, %9 : vector<16x128xf32>
    %cst_19 = arith.constant 9.99999974E-5 : f32
    %28 = vector.broadcast %cst_19 : f32 to vector<16x128xf32>
    %29 = arith.addf %27, %28 : vector<16x128xf32>
    %cst_20 = arith.constant 2.000000e+00 : f32
    %30 = vector.broadcast %cst_20 : f32 to vector<16x128xf32>
    %31 = arith.mulf %30, %24 : vector<16x128xf32>
    %cst_21 = arith.constant 8.99999984E-4 : f32
    %32 = vector.broadcast %cst_21 : f32 to vector<16x128xf32>
    %33 = arith.addf %31, %32 : vector<16x128xf32>
    %34 = arith.mulf %29, %33 : vector<16x128xf32>
    %35 = arith.mulf %7, %7 : vector<16x128xf32>
    %36 = arith.mulf %9, %9 : vector<16x128xf32>
    %37 = arith.addf %35, %36 : vector<16x128xf32>
    %cst_22 = arith.constant 9.99999974E-5 : f32
    %38 = vector.broadcast %cst_22 : f32 to vector<16x128xf32>
    %39 = arith.addf %37, %38 : vector<16x128xf32>
    %40 = arith.addf %14, %19 : vector<16x128xf32>
    %cst_23 = arith.constant 8.99999984E-4 : f32
    %41 = vector.broadcast %cst_23 : f32 to vector<16x128xf32>
    %42 = arith.addf %40, %41 : vector<16x128xf32>
    %43 = arith.mulf %39, %42 : vector<16x128xf32>
    %44 = arith.divf %34, %43 : vector<16x128xf32>
    %45 = vector.shape_cast %44 : vector<16x128xf32> to vector<1x16x128xf32>
    %cst_24 = arith.constant dense<0.000000e+00> : vector<1xf32>
    %46 = vector.multi_reduction <add>, %45, %cst_24 [1, 2] : vector<1x16x128xf32> to vector<1xf32>
    %47 = vector.shape_cast %46 : vector<1xf32> to vector<1x1x1xf32>
    %48 = vector.extract %47[0, 0, 0] : f32 from vector<1x1x1xf32>
    %cst_25 = arith.constant 0.000000e+00 : f32
    %49 = arith.addf %cst_25, %48 : f32
    %50 = arith.subf %3, %5 : vector<16x128xf32>
    %51 = arith.mulf %50, %50 : vector<16x128xf32>
    %52 = vector.shape_cast %51 : vector<16x128xf32> to vector<1x16x128xf32>
    %cst_26 = arith.constant dense<0.000000e+00> : vector<1xf32>
    %53 = vector.multi_reduction <add>, %52, %cst_26 [1, 2] : vector<1x16x128xf32> to vector<1xf32>
    %54 = vector.shape_cast %53 : vector<1xf32> to vector<1x1x1xf32>
    %55 = vector.extract %54[0, 0, 0] : f32 from vector<1x1x1xf32>
    %cst_27 = arith.constant 0.000000e+00 : f32
    %56 = arith.addf %cst_27, %55 : f32
    %57 = arith.index_cast %arg0 : i32 to index
    %58 = memref.load %arg5[%57] : memref<1xf32, #tpu.memory_space<smem>>
    memref.store %49, %arg5[%57] : memref<1xf32, #tpu.memory_space<smem>>
    %59 = arith.index_cast %arg0 : i32 to index
    %60 = memref.load %arg6[%59] : memref<1xf32, #tpu.memory_space<smem>>
    memref.store %56, %arg6[%59] : memref<1xf32, #tpu.memory_space<smem>>
    return
  }
  func.func @transform_0(%arg0: i32) -> (i32, i32, i32) {
    %c0_i32 = arith.constant 0 : i32
    %c0_i32_0 = arith.constant 0 : i32
    %c0_i32_1 = arith.constant 0 : i32
    return %arg0, %c0_i32, %c0_i32_0 : i32, i32, i32
  }
  func.func @transform_1(%arg0: i32) -> (i32, i32, i32) {
    %c0_i32 = arith.constant 0 : i32
    %c0_i32_0 = arith.constant 0 : i32
    %c0_i32_1 = arith.constant 0 : i32
    return %arg0, %c0_i32, %c0_i32_0 : i32, i32, i32
  }
  func.func @transform_2(%arg0: i32) -> (i32, i32) {
    %c0_i32 = arith.constant 0 : i32
    %c0_i32_0 = arith.constant 0 : i32
    %c0_i32_1 = arith.constant 0 : i32
    return %c0_i32, %c0_i32_0 : i32, i32
  }
  func.func @transform_3(%arg0: i32) -> (i32, i32) {
    %c0_i32 = arith.constant 0 : i32
    %c0_i32_0 = arith.constant 0 : i32
    %c0_i32_1 = arith.constant 0 : i32
    return %c0_i32, %c0_i32_0 : i32, i32
  }
  func.func @transform_4(%arg0: i32) -> i32 {
    %c0_i32 = arith.constant 0 : i32
    %c0_i32_0 = arith.constant 0 : i32
    return %c0_i32 : i32
  }
  func.func @transform_5(%arg0: i32) -> i32 {
    %c0_i32 = arith.constant 0 : i32
    %c0_i32_0 = arith.constant 0 : i32
    return %c0_i32 : i32
  }
}

</mosaic_0001>

<bundles_post_ra>
// kernel: tpu_custom_call.1
= control target key start
LH: loop header
LB: loop body
LE: loop exit
PB: predicated region body
PF: predicated region fallthrough
CT: control target
= control target key end

     0   :  { %11 = vsyncpa [#allocation3], 0  ;;  %s860_s0 = inlined_call_operand.hbm [shape: f32[1,16,128], index: 0, kind: input, shape index: {}]   ;;  %s861_s1 = inlined_call_operand.hbm [shape: f32[1,16,128], index: 1, kind: input, shape index: {}]   ;;  %s862_s2 = inlined_call_operand.hbm [shape: f32[16,16], index: 2, kind: input, shape index: {}]   ;;  %s863_s3 = inlined_call_operand.hbm [shape: f32[128,128], index: 3, kind: input, shape index: {}]   ;;  %s864_s4 = inlined_call_operand.hbm [shape: f32[1], index: 4, kind: output, shape index: {0}]   ;;  %s865_s5 = inlined_call_operand.hbm [shape: f32[1], index: 5, kind: output, shape index: {1}]  }
   0x1   :  { %12 = vsyncpa [#allocation6], 0 }
   0x2   :  { %13 = vsyncpa [#allocation9], 0 }
   0x3   :  { %14 = vsyncpa [#allocation4], 0 }
   0x4   :  { %15 = vsyncpa [#allocation12], 0  ;;  %s33_s20 = sshll.u32 %s861_s1, 4  ;;  %s631_s21 = smov [#allocation5]   ;;  %s34_s20 = int_to_ptr.hbm [resolvable:$true] %s33_s20 }
   0x5   :  { %s35_s22 = sshll.u32 %s631_s21, 4  ;;  %s20_s25 = sshll.u32 %s860_s0, 4  ;;  %s36_s22 = int_to_ptr.vmem [resolvable:$true] %s35_s22  ;;  %s21_s25 = int_to_ptr.hbm [resolvable:$true] %s20_s25 }
   0x6   :  { %s632_s26 = smov 128   ;;  %s633_s27 = smov 8  }
   0x7   :  { %41 = dma.hbm_to_vmem [thread:$0]  %s34_s20, 256, %s36_s22, [#allocation6], %s632_s26, %s632_s26, %s633_s27  }
   0x8   :  { %s634_s28 = smov [#allocation2]   ;;  %s46_s7 = sshll.u32 %s862_s2, 4  ;;  %s47_s7 = int_to_ptr.hbm [resolvable:$true] %s46_s7 }
   0x9   :  { %s22_s29 = sshll.u32 %s634_s28, 4  ;;  %s59_s9 = sshll.u32 %s863_s3, 4  ;;  %s23_s29 = int_to_ptr.vmem [resolvable:$true] %s22_s29  ;;  %s60_s9 = int_to_ptr.hbm [resolvable:$true] %s59_s9 }
   0xa   :  { %28 = dma.hbm_to_vmem [thread:$0]  %s21_s25, 256, %s23_s29, [#allocation3], %s632_s26, %s632_s26, %s633_s27  }
   0xb   :  { %s635_s10 = smov [#allocation7]   ;;  %s636_s0 = smov [#allocation8]  }
   0xc   :  { %s48_s11 = sshll.u32 %s635_s10, 4  ;;  %s61_s12 = sshll.u32 %s636_s0, 4  ;;  %s49_s11 = int_to_ptr.vmem [resolvable:$true] %s48_s11  ;;  %s62_s12 = int_to_ptr.vmem [resolvable:$true] %s61_s12 }
   0xd   :  { %54 = dma.hbm_to_vmem [thread:$0]  %s47_s7, 256, %s49_s11, [#allocation6], %s632_s26, %s632_s26, %s633_s27  }
   0xe   :  { %67 = dma.hbm_to_vmem [thread:$0]  %s60_s9, 2048, %s62_s12, [#allocation9], %s632_s26, %s632_s26, %s633_s27  }
   0xf   :  { %621 = dma.done.wait [#allocation3], 256  }
  0x10   :  { %622 = vsyncadd [#allocation3], 4294967040 }
  0x11   :  { %623 = dma.done.wait [#allocation6], 512  }
  0x12   :  { %624 = vsyncadd [#allocation6], 4294966784 }
  0x13   :  { %625 = dma.done.wait [#allocation9], 2048  }
  0x14   :  { %626 = vsyncadd [#allocation9], 4294965248  ;;  %v681_v0 = vld [vmem:[#allocation8 + $0x78] sm:$0xff]  ;;  %v683_v1 = vld [vmem:[#allocation8 + $0x70] sm:$0xff]  ;;  %vm129_vm0 = vcmask 130048   ;;  %s448_s13 = sshll.u32 %s864_s4, 4  ;;  %s449_s13 = int_to_ptr.hbm [resolvable:$true] %s448_s13 }
  0x15   :  { %106 = vmatpush.msra.mxu0 %v681_v0  ;;  %159 = vmatpush.msra.mxu2 %v681_v0  ;;  %v687_v2 = vld [vmem:[#allocation8 + $0x68] sm:$0xff]  ;;  %v691_v3 = vld [vmem:[#allocation8 + $0x60] sm:$0xff]  ;;  %v695_v4 = vld [vmem:[#allocation8 + $0x58] sm:$0xff]  ;;  %s637_s15 = smov [#allocation10]   ;;  %s457_s18 = sshll.u32 %s865_s5, 4  ;;  %s458_s18 = int_to_ptr.hbm [resolvable:$true] %s457_s18 }
  0x16   :  { %v699_v5 = vld [vmem:[#allocation8 + $0x50] sm:$0xff]  ;;  %v703_v6 = vld [vmem:[#allocation8 + $0x48] sm:$0xff]  ;;  %v707_v7 = vld [vmem:[#allocation8 + $0x40] sm:$0xff]  ;;  %s638_s20 = smov [#allocation11]  }
  0x17   :  { %107 = vmatpush.msra.mxu0 %v683_v1  ;;  %160 = vmatpush.msra.mxu2 %v683_v1  ;;  %v711_v8 = vld [vmem:[#allocation8 + $0x38] sm:$0xff]  ;;  %v715_v9 = vld [vmem:[#allocation8 + $0x30] sm:$0xff]  ;;  %v719_v10 = vld [vmem:[#allocation8 + $0x28] sm:$0xff] }
  0x18   :  { %v723_v11 = vld [vmem:[#allocation8 + $0x20] sm:$0xff]  ;;  %v727_v12 = vld [vmem:[#allocation8 + $0x18] sm:$0xff]  ;;  %v731_v13 = vld [vmem:[#allocation8 + $0x10] sm:$0xff] }
  0x19   :  { %108 = vmatpush.msra.mxu0 %v687_v2  ;;  %161 = vmatpush.msra.mxu2 %v687_v2  ;;  %v735_v14 = vld [vmem:[#allocation8 + $0x8] sm:$0xff]  ;;  %v739_v15 = vld [vmem:[#allocation8] sm:$0xff]  ;;  %v742_v16 = vld [vmem:[#allocation2] sm:$0xff] }
  0x1a   :  { %v745_v17 = vld [vmem:[#allocation5] sm:$0xff]  ;;  %v753_v18 = vld [vmem:[#allocation2 + $0x8] sm:$0xff]  ;;  %v755_v19 = vld [vmem:[#allocation5 + $0x8] sm:$0xff]  ;;  %v205_v29 = vmul.f32 %v742_v16, %v742_v16 }
  0x1b   :  { %109 = vmatpush.msra.mxu0 %v691_v3  ;;  %162 = vmatpush.msra.mxu2 %v691_v3  ;;  %v309_v20 = vmul.f32 %v745_v17, %v742_v16  ;;  %v310_v21 = vmul.f32 %v755_v19, %v753_v18  ;;  %v778_v25 = vld [vmem:[#allocation7] sm:$0xff]  ;;  %v788_v27 = vld [vmem:[#allocation7 + $0x8] sm:$0xff]  ;;  %v206_v31 = vmul.f32 %v753_v18, %v753_v18 }
  0x1c   :  { %v257_v49 = vmul.f32 %v745_v17, %v745_v17  ;;  %v258_v50 = vmul.f32 %v755_v19, %v755_v19 }
  0x1d   :  { %110 = vmatpush.msra.mxu0 %v695_v4  ;;  %163 = vmatpush.msra.mxu2 %v695_v4 }
  0x1f   :  { %111 = vmatpush.msra.mxu0 %v699_v5  ;;  %164 = vmatpush.msra.mxu2 %v699_v5 }
  0x21   :  { %112 = vmatpush.msra.mxu0 %v703_v6  ;;  %165 = vmatpush.msra.mxu2 %v703_v6 }
  0x23   :  { %113 = vmatpush.msra.mxu0 %v707_v7  ;;  %166 = vmatpush.msra.mxu2 %v707_v7 }
  0x25   :  { %114 = vmatpush.msra.mxu0 %v711_v8  ;;  %167 = vmatpush.msra.mxu2 %v711_v8 }
  0x27   :  { %115 = vmatpush.msra.mxu0 %v715_v9  ;;  %168 = vmatpush.msra.mxu2 %v715_v9 }
  0x29   :  { %116 = vmatpush.msra.mxu0 %v719_v10  ;;  %169 = vmatpush.msra.mxu2 %v719_v10 }
  0x2b   :  { %117 = vmatpush.msra.mxu0 %v723_v11  ;;  %170 = vmatpush.msra.mxu2 %v723_v11 }
  0x2d   :  { %118 = vmatpush.msra.mxu0 %v727_v12  ;;  %171 = vmatpush.msra.mxu2 %v727_v12 }
  0x2f   :  { %119 = vmatpush.msra.mxu0 %v731_v13  ;;  %172 = vmatpush.msra.mxu2 %v731_v13 }
  0x31   :  { %120 = vmatpush.msra.mxu0 %v735_v14  ;;  %173 = vmatpush.msra.mxu2 %v735_v14 }
  0x33   :  { %121 = vmatpush.msra.mxu0 %v739_v15  ;;  %174 = vmatpush.msra.mxu2 %v739_v15 }
  0x34   :  { %122 = vmatmul.f32.vlgmr.msra.gmra.mxu0 %v742_v16  ;;  %175 = vmatmul.f32.vlgmr.msra.gmra.mxu2 %v745_v17 }
  0x35   :  { %311 = vmatpush.msrb.mxu2 %v681_v0 }
  0x37   :  { %312 = vmatpush.msrb.mxu2 %v683_v1 }
  0x39   :  { %313 = vmatpush.msrb.mxu2 %v687_v2 }
  0x3b   :  { %314 = vmatpush.msrb.mxu2 %v691_v3 }
  0x3c   :  { %125 = vmatmul.f32.gmra.mxu0 %v753_v18  ;;  %178 = vmatmul.f32.gmra.mxu2 %v755_v19 }
  0x3d   :  { %315 = vmatpush.msrb.mxu2 %v695_v4 }
  0x3f   :  { %316 = vmatpush.msrb.mxu2 %v699_v5 }
  0x41   :  { %317 = vmatpush.msrb.mxu2 %v703_v6 }
  0x43   :  { %318 = vmatpush.msrb.mxu2 %v707_v7 }
  0x45   :  { %319 = vmatpush.msrb.mxu2 %v711_v8 }
  0x47   :  { %320 = vmatpush.msrb.mxu2 %v715_v9 }
  0x49   :  { %321 = vmatpush.msrb.mxu2 %v719_v10 }
  0x4b   :  { %322 = vmatpush.msrb.mxu2 %v723_v11 }
  0x4d   :  { %323 = vmatpush.msrb.mxu2 %v727_v12 }
  0x4f   :  { %324 = vmatpush.msrb.mxu2 %v731_v13 }
  0x51   :  { %325 = vmatpush.msrb.mxu2 %v735_v14 }
  0x53   :  { %326 = vmatpush.msrb.mxu2 %v739_v15 }
  0x54   :  { %327 = vmatmul.f32.vlgmr.msrb.gmra.mxu2 %v309_v20 }
  0x5c   :  { %330 = vmatmul.f32.gmra.mxu2 %v310_v21 }
  0xb1   :  { %v123_v22 = vpop.f32.mrf.mxu0 }
  0xb7   :  { %v176_v23 = vpop.f32.mrf.mxu2 }
  0xb9   :  { %v126_v24 = vpop.f32.mrf.mxu0 }
  0xba   :  { %150 = vmatpush.msra.mxu1 %v126_v24 }
  0xbc   :  { %151 = vmatpush.msra.mxu1 %v123_v22 }
  0xbd   :  { %475 = vmatmul.msk.f32.vlgmr.msra.gmra.mxu1 %vm129_vm0, %v778_v25 }
  0xbe   :  { %207 = vmatpush.msrb.mxu1 %v681_v0 }
  0xbf   :  { %v179_v26 = vpop.f32.mrf.mxu2 }
  0xc0   :  { %208 = vmatpush.msrb.mxu1 %v683_v1  ;;  %196 = vmatpush.msra.mxu3 %v179_v26 }
  0xc2   :  { %209 = vmatpush.msrb.mxu1 %v687_v2  ;;  %197 = vmatpush.msra.mxu3 %v176_v23 }
  0xc3   :  { %477 = vmatmul.msk.f32.vlgmr.msra.gmra.mxu3 %vm129_vm0, %v778_v25 }
  0xc4   :  { %210 = vmatpush.msrb.mxu1 %v691_v3 }
  0xc5   :  { %476 = vmatmul.msk.f32.gmra.mxu1 %vm129_vm0, %v788_v27 }
  0xc6   :  { %211 = vmatpush.msrb.mxu1 %v695_v4 }
  0xc8   :  { %212 = vmatpush.msrb.mxu1 %v699_v5 }
  0xca   :  { %213 = vmatpush.msrb.mxu1 %v703_v6 }
  0xcb   :  { %478 = vmatmul.msk.f32.gmra.mxu3 %vm129_vm0, %v788_v27 }
  0xcc   :  { %214 = vmatpush.msrb.mxu1 %v707_v7 }
  0xce   :  { %215 = vmatpush.msrb.mxu1 %v711_v8 }
  0xd0   :  { %216 = vmatpush.msrb.mxu1 %v715_v9 }
  0xd2   :  { %217 = vmatpush.msrb.mxu1 %v719_v10 }
  0xd4   :  { %218 = vmatpush.msrb.mxu1 %v723_v11 }
  0xd6   :  { %219 = vmatpush.msrb.mxu1 %v727_v12 }
  0xd7   :  { %v328_v28 = vpop.f32.mrf.mxu2 }
  0xd8   :  { %220 = vmatpush.msrb.mxu1 %v731_v13 }
  0xda   :  { %221 = vmatpush.msrb.mxu1 %v735_v14 }
  0xdc   :  { %222 = vmatpush.msrb.mxu1 %v739_v15 }
  0xdd   :  { %223 = vmatmul.f32.vlgmr.msrb.gmra.mxu1 %v205_v29 }
  0xdf   :  { %v331_v30 = vpop.f32.mrf.mxu2 }
  0xe0   :  { %348 = vmatpush.msra.mxu1 %v331_v30 }
  0xe2   :  { %349 = vmatpush.msra.mxu1 %v328_v28 }
  0xe5   :  { %226 = vmatmul.f32.gmra.mxu1 %v206_v31 }
  0xed   :  { %483 = vmatmul.msk.f32.vlgmr.msra.gmra.mxu1 %vm129_vm0, %v778_v25 }
  0xf5   :  { %484 = vmatmul.msk.f32.gmra.mxu1 %vm129_vm0, %v788_v27 }
 0x13a   :  { %v153_v32 = vpop.f32.mrf.mxu1 }
 0x13b   :  { %v361_v33 = vmul.f32 2.0, %v153_v32  ;;  %v253_v34 = vmul.f32 %v153_v32, %v153_v32 }
 0x142   :  { %v813_v40 = vpop.f32.mrf.mxu1 }
 0x143   :  { %v254_v54 = vmul.f32 %v813_v40, %v813_v40  ;;  %v362_v22 = vmul.f32 2.0, %v813_v40 }
 0x146   :  { %v199_v35 = vpop.f32.mrf.mxu3 }
 0x147   :  { %v363_v36 = vmul.f32 %v361_v33, %v199_v35  ;;  %v357_v37 = vmul.f32 %v199_v35, %v153_v32  ;;  %v305_v38 = vmul.f32 %v199_v35, %v199_v35 }
 0x149   :  { %v373_v39 = vadd.f32 %v305_v38, %v253_v34  ;;  %v365_v46 = vadd.f32 0.0001, %v363_v36 }
 0x14b   :  { %v375_v62 = vadd.f32 0.0001, %v373_v39 }
 0x14e   :  { %v202_v51 = vpop.f32.mrf.mxu3 }
 0x14f   :  { %v364_v30 = vmul.f32 %v362_v22, %v202_v51 }
 0x15a   :  { %v224_v41 = vpop.f32.mrf.mxu1 }
 0x162   :  { %v227_v42 = vpop.f32.mrf.mxu1 }
 0x163   :  { %244 = vmatpush.msrb.mxu3 %v227_v42 }
 0x165   :  { %245 = vmatpush.msrb.mxu3 %v224_v41 }
 0x166   :  { %479 = vmatmul.msk.f32.vlgmr.msrb.gmra.mxu3 %vm129_vm0, %v778_v25 }
 0x167   :  { %259 = vmatpush.msra.mxu3 %v681_v0  ;;  %v306_v0 = vmul.f32 %v202_v51, %v202_v51 }
 0x169   :  { %260 = vmatpush.msra.mxu3 %v683_v1 }
 0x16a   :  { %v351_v43 = vpop.f32.mrf.mxu1 }
 0x16b   :  { %261 = vmatpush.msra.mxu3 %v687_v2  ;;  %v359_v44 = vsub.f32 %v351_v43, %v357_v37  ;;  %v366_v37 = vadd.f32 0.0001, %v364_v30 }
 0x16d   :  { %v367_v45 = vmul.f32 2.0, %v359_v44  ;;  %262 = vmatpush.msra.mxu3 %v691_v3  ;;  %v424_v44 = vsub.f32 %v742_v16, %v745_v17 }
 0x16e   :  { %480 = vmatmul.msk.f32.gmra.mxu3 %vm129_vm0, %v788_v27 }
 0x16f   :  { %v369_v47 = vadd.f32 0.0009, %v367_v45  ;;  %263 = vmatpush.msra.mxu3 %v695_v4  ;;  %v374_v4 = vadd.f32 %v306_v0, %v254_v54  ;;  %v425_v45 = vsub.f32 %v753_v18, %v755_v19 }
 0x171   :  { %v824_v48 = vmul.f32 %v369_v47, %v365_v46  ;;  %264 = vmatpush.msra.mxu3 %v699_v5  ;;  %v426_v47 = vmul.f32 %v424_v44, %v424_v44 }
 0x173   :  { %265 = vmatpush.msra.mxu3 %v703_v6  ;;  %v376_v6 = vadd.f32 0.0001, %v374_v4 }
 0x175   :  { %266 = vmatpush.msra.mxu3 %v707_v7 }
 0x177   :  { %267 = vmatpush.msra.mxu3 %v711_v8 }
 0x179   :  { %268 = vmatpush.msra.mxu3 %v715_v9 }
 0x17b   :  { %269 = vmatpush.msra.mxu3 %v719_v10 }
 0x17d   :  { %270 = vmatpush.msra.mxu3 %v723_v11  ;;  %v354_v11 = vpop.f32.mrf.mxu1 }
 0x17f   :  { %271 = vmatpush.msra.mxu3 %v727_v12  ;;  %v358_v12 = vmul.f32 %v202_v51, %v813_v40 }
 0x181   :  { %272 = vmatpush.msra.mxu3 %v731_v13 }
 0x183   :  { %273 = vmatpush.msra.mxu3 %v735_v14 }
 0x185   :  { %274 = vmatpush.msra.mxu3 %v739_v15  ;;  %v360_v15 = vsub.f32 %v354_v11, %v358_v12 }
 0x186   :  { %275 = vmatmul.f32.vlgmr.msra.gmra.mxu3 %v257_v49 }
 0x187   :  { %v368_v26 = vmul.f32 2.0, %v360_v15 }
 0x18e   :  { %278 = vmatmul.f32.gmra.mxu3 %v258_v50 }
 0x1e9   :  { %v247_v52 = vpop.f32.mrf.mxu3 }
 0x1ea   :  { %v255_v53 = vsub.f32 %v247_v52, %v253_v34  ;;  %v370_v34 = vadd.f32 0.0009, %v368_v26 }
 0x1ec   :  { %v372_v40 = vmul.f32 %v370_v34, %v366_v37 }
 0x1f1   :  { %v250_v55 = vpop.f32.mrf.mxu3 }
 0x1f2   :  { %v256_v56 = vsub.f32 %v250_v55, %v254_v54 }
 0x209   :  { %v276_v57 = vpop.f32.mrf.mxu3 }
 0x211   :  { %v279_v58 = vpop.f32.mrf.mxu3 }
 0x212   :  { %296 = vmatpush.msrb.mxu0 %v279_v58 }
 0x214   :  { %297 = vmatpush.msrb.mxu0 %v276_v57 }
 0x215   :  { %481 = vmatmul.msk.f32.vlgmr.msrb.gmra.mxu0 %vm129_vm0, %v778_v25 }
 0x21d   :  { %482 = vmatmul.msk.f32.gmra.mxu0 %vm129_vm0, %v788_v27 }
 0x292   :  { %v299_v59 = vpop.f32.mrf.mxu0 }
 0x293   :  { %v307_v60 = vsub.f32 %v299_v59, %v305_v38 }
 0x295   :  { %v377_v61 = vadd.f32 %v307_v60, %v255_v53 }
 0x297   :  { %v379_v63 = vadd.f32 0.0009, %v377_v61 }
 0x299   :  { %v381_v1 = vmul.f32 %v379_v63, %v375_v62 }
 0x29a   :  { %v302_v2 = vpop.f32.mrf.mxu0 }
 0x29b   :  { %497 = vrcp.f32 %v381_v1  ;;  %v308_v3 = vsub.f32 %v302_v2, %v306_v0  ;;  %v394_v14 = vand.u32 2147483648, %v381_v1  ;;  %v392_v21 = vand.u32 2147483647, %v381_v1 }
 0x29c   :  { %vm388_vm2 = vweird.f32 %v381_v1 }
 0x29d   :  { %v378_v5 = vadd.f32 %v308_v3, %v256_v56  ;;  %v395_v25 = vor.u32 1.1754944e-38, %v394_v14  ;;  %vm393_vm4 = vcmp.eq.f32.partialorder %v392_v21, 8.507059e+37 }
 0x29f   :  { %v380_v7 = vadd.f32 0.0009, %v378_v5 }
 0x2a1   :  { %v498_v8 = vpop.eup %497  ;;  %v382_v9 = vmul.f32 %v380_v7, %v376_v6 }
 0x2a2   :  { %v384_v10 = vmul.f32 %v498_v8, %v381_v1  ;;  %vm389_vm1 = vweird.f32 %v498_v8 }
 0x2a3   :  { %499 = vrcp.f32 %v382_v9  ;;  %vm390_vm3 = vmor %vm388_vm2, %vm389_vm1  ;;  %v409_v33 = vand.u32 2147483648, %v382_v9  ;;  %v407_v36 = vand.u32 2147483647, %v382_v9  ;;  %vm403_vm6 = vweird.f32 %v382_v9 }
 0x2a4   :  { %v385_v13 = vsub.f32 1.0, %v384_v10 }
 0x2a5   :  { %v410_v39 = vor.u32 1.1754944e-38, %v409_v33  ;;  %vm408_vm8 = vcmp.eq.f32.partialorder %v407_v36, 8.507059e+37 }
 0x2a6   :  { %v386_v20 = vmul.f32 %v498_v8, %v385_v13 }
 0x2a8   :  { %v387_v23 = vadd.f32 %v498_v8, %v386_v20 }
 0x2a9   :  { %v500_v24 = vpop.eup %499 }
 0x2aa   :  { %v391_v27 = vsel %vm390_vm3, %v498_v8, %v387_v23  ;;  %v399_v28 = vmul.f32 %v500_v24, %v382_v9  ;;  %vm404_vm5 = vweird.f32 %v500_v24 }
 0x2ab   :  { %v396_v29 = vsel %vm393_vm4, %v395_v25, %v391_v27  ;;  %vm405_vm7 = vmor %vm403_vm6, %vm404_vm5 }
 0x2ac   :  { %v397_v31 = vmul.f32 %v396_v29, %v824_v48  ;;  %v400_v32 = vsub.f32 1.0, %v399_v28  ;;  %v427_v48 = vmul.f32 %v425_v45, %v425_v45 }
 0x2ae   :  { %v401_v35 = vmul.f32 %v500_v24, %v400_v32  ;;  %v428_v49 = vadd.f32 %v427_v48, %v426_v47 }
 0x2b0   :  { %v402_v38 = vadd.f32 %v500_v24, %v401_v35 }
 0x2b2   :  { %v406_v41 = vsel %vm405_vm7, %v500_v24, %v402_v38 }
 0x2b3   :  { %v411_v42 = vsel %vm408_vm8, %v410_v39, %v406_v41 }
 0x2b4   :  { %v412_v43 = vmul.f32 %v411_v42, %v372_v40 }
 0x2b6   :  { %v413_v46 = vadd.f32 %v412_v43, %v397_v31 }
 0x2b8   :  { %414 = vadd.xlane.f32.xlu0 %v413_v46 }
 0x2c0   :  { %429 = vadd.xlane.f32.xlu0 %v428_v49 }
 0x32b   :  { %v415_v50 = vpop.xlane.xlu0 %414 }
 0x32c   :  { %v416_v51 = vrot.slane %v415_v50, 4 }
 0x32e   :  { %v417_v52 = vadd.f32 %v416_v51, %v415_v50 }
 0x330   :  { %v418_v53 = vrot.slane %v417_v52, 2 }
 0x332   :  { %v419_v54 = vadd.f32 %v418_v53, %v417_v52 }
 0x333   :  { %v430_v55 = vpop.xlane.xlu0 %429 }
 0x334   :  { %v420_v56 = vrot.slane %v419_v54, 1  ;;  %v431_v57 = vrot.slane %v430_v55, 4 }
 0x336   :  { %v421_v58 = vadd.f32 %v420_v56, %v419_v54  ;;  %v432_v59 = vadd.f32 %v431_v57, %v430_v55 }
 0x338   :  { %485 = vpush %v421_v58  ;;  %v433_v16 = vrot.slane %v432_v59, 2 }
 0x33a   :  { %v434_v17 = vadd.f32 %v433_v16, %v432_v59 }
 0x33c   :  { %v435_v18 = vrot.slane %v434_v17, 1 }
 0x33e   :  { %v436_v19 = vadd.f32 %v435_v18, %v434_v17 }
 0x340   :  { %487 = vpush %v436_v19 }
 0x369   :  { %s486_s14 = spop %485 }
 0x36a   :  { %440 = sst [smem:[#allocation10]] %s486_s14 }
 0x36b   :  { %451 = dma.smem_to_hbm %s637_s15, 16, %s449_s13, [#allocation4]  }
 0x371   :  { %s488_s19 = spop %487 }
 0x372   :  { %442 = sst [smem:[#allocation11]] %s488_s19 }
 0x373   :  { %460 = dma.smem_to_hbm %s638_s20, 16, %s458_s18, [#allocation12]  }
 0x374   :  { %627 = dma.done.wait [#allocation4], 16  }
 0x375   :  { %628 = vsyncadd [#allocation4], 4294967280 }
 0x376   :  { %629 = dma.done.wait [#allocation12], 16  }
 0x377   :  { %630 = vsyncadd [#allocation12], 4294967280 }
 0x378   :  { %469 = sfence }
 0x379   :  { %470 = vsyncpa [#allocation3], 1 }
 0x37a   :  { %471 = vsyncpa [#allocation6], 1 }
 0x37b   :  { %472 = vsyncpa [#allocation9], 1 }
 0x37c   :  { %473 = vsyncpa [#allocation4], 1 }
 0x37d   :  { %474 = vsyncpa [#allocation12], 1 }

</bundles_post_ra>
